<compile_context>
chip_gen: v7x
topology: tpu7x:2x2x1
jax: 0.10.0
libtpu: 0.0.40
codegen_flags: <defaults>
</compile_context>

<pallas_src>
import jax
import jax.numpy as jnp
from jax.experimental import pallas as pl
from jax.experimental.pallas import tpu as pltpu


LANE = 128
SUBLANE = 16    # row-tile granularity: covers f32 (8) and bf16 (16) sublane packing


def _round_up(v, m):
    return (v + m - 1) // m * m


# ---------------------------------------------------------------------------
# Module configuration helpers (mirrors TransformerEncoder_SERVER.__init__)
# ---------------------------------------------------------------------------
def _build_dims(embed_dim, num_layers, expansion_factor):
    array = [embed_dim]
    for _ in range(num_layers):
        array.append(round(array[-1] * expansion_factor))
    return array


def init_params(key, *, embed_dim, num_layers, expansion_factor, split_layer,
                num_classes, dtype=jnp.float32):
    """Deterministic parameter init mimicking nn.Linear default U(-1/sqrt(fan_in), ...)."""
    array = _build_dims(embed_dim, num_layers, expansion_factor)
    sl = split_layer + 1

    def linear(k, d_in, d_out):
        k1, k2 = jax.random.split(k)
        bound = 1.0 / float(d_in) ** 0.5
        w = jax.random.uniform(k1, (d_in, d_out), dtype, -bound, bound)
        b = jax.random.uniform(k2, (1, d_out), dtype, -bound, bound)
        return w, b

    n_ff = num_layers - sl
    keys = jax.random.split(key, 2 * n_ff + 2)
    ki = 0
    ff = []
    for i in range(sl, num_layers):
        w1, b1 = linear(keys[ki], array[i], array[i]); ki += 1
        w2, b2 = linear(keys[ki], array[i], array[i + 1]); ki += 1
        ff.append((w1, b1, w2, b2))
    wout, bout = linear(keys[ki], array[-1], embed_dim); ki += 1
    gamma = jnp.ones((1, embed_dim), dtype)     # LayerNorm weight
    beta = jnp.zeros((1, embed_dim), dtype)     # LayerNorm bias
    wfc, bfc = linear(keys[ki], embed_dim, num_classes)
    params = (ff, (wout, bout), (gamma, beta), (wfc, bfc))
    return array, params


# ---------------------------------------------------------------------------
# Pallas kernel: one tile of token rows per grid step; all weights VMEM-resident
# ---------------------------------------------------------------------------
def make_kernel(n_ff, compute_dtype):

    def kernel(*refs):
        it = iter(refs)
        x_ref = next(it)      # (TM, d_split) feed_fwd_out tile (native dtype)
        res_ref = next(it)    # (TM, D)       norm1_out tile / residual

        h = x_ref[...].astype(compute_dtype)
        for _ in range(n_ff):
            w1 = next(it); b1 = next(it); w2 = next(it); b2 = next(it)
            # Linear -> ReLU -> Dropout(eval: identity); f32 accumulation.
            h = jnp.maximum(
                jnp.dot(h, w1[...], preferred_element_type=jnp.float32)
                + b1[...], 0.0).astype(compute_dtype)
            h = jnp.maximum(
                jnp.dot(h, w2[...], preferred_element_type=jnp.float32)
                + b2[...], 0.0).astype(compute_dtype)

        wout = next(it); bout = next(it)
        gamma = next(it); beta = next(it)
        wfc = next(it); bfc = next(it)
        o_ref = next(it)      # (TM, num_classes) narrow output block

        # feed_out(feed_fwd_out) + norm1_out   (f32)
        r = (jnp.dot(h, wout[...], preferred_element_type=jnp.float32)
             + bout[...] + res_ref[...].astype(jnp.float32))

        # LayerNorm, one-pass biased stats (var = E[x^2] - mean^2), as torch, f32.
        mean = jnp.mean(r, axis=-1, keepdims=True)
        meansq = jnp.mean(r * r, axis=-1, keepdims=True)
        var = meansq - mean * mean
        normed = (r - mean) * jax.lax.rsqrt(var + 1e-5)
        normed = normed * gamma[...] + beta[...]
        # dropout2 is identity in eval mode.

        # Final projection; output stays narrow (num_classes lanes) so HBM
        # writeback is num_classes * 4 B/row instead of a 128-lane slab.
        out = (jnp.dot(normed.astype(compute_dtype), wfc[...],
                       preferred_element_type=jnp.float32) + bfc[...])
        o_ref[...] = out.astype(o_ref.dtype)

    return kernel


# ---------------------------------------------------------------------------
# Wrapper
# ---------------------------------------------------------------------------
def transformer_encoder_server_forward(feed_fwd_out, norm1_out, params, *,
                                       tile_m=1024, compute_dtype=jnp.bfloat16):
    """src = (feed_fwd_out, norm1_out); returns fc_out(norm2(feed_out(ff(x)) + norm1_out))."""
    B, S, d_split = feed_fwd_out.shape
    D = norm1_out.shape[-1]
    N = B * S
    out_dtype = feed_fwd_out.dtype

    ff, (wout, bout), (gamma, beta), (wfc, bfc) = params
    num_classes = wfc.shape[1]

    # Row-tile selection: big tiles amortize the ~0.35us/step pipeline overhead
    # and the fixed weight-push cost of the ~10 tiny matmuls; clamp so the
    # parallel grid has >= 2 steps when enough rows exist (keeps both v7x TCs busy).
    tile_m = _round_up(max(tile_m, SUBLANE), SUBLANE)
    n_ceil = _round_up(N, SUBLANE)
    tile_m = min(tile_m, n_ceil)
    if n_ceil >= 2 * SUBLANE:
        tile_m = min(tile_m, _round_up(pl.cdiv(N, 2), SUBLANE))
    grid_m = pl.cdiv(N, tile_m)

    # No wrapper-side pad/astype passes: stream activations in native dtype; the
    # boundary block is clipped by Pallas (tail rows hold unspecified data, but
    # every row is independent and out-of-range output rows are never written back).
    x = feed_fwd_out.reshape(N, d_split)
    res = norm1_out.reshape(N, D)

    # Matmul weights cast once to compute_dtype (tiny, one-time); biases and
    # LayerNorm params stay f32 (added to f32 accumulators).
    flat_weights = []
    flops = 0
    for (w1, b1, w2, b2) in ff:
        flat_weights += [w1.astype(compute_dtype), b1.astype(jnp.float32),
                         w2.astype(compute_dtype), b2.astype(jnp.float32)]
        flops += 2 * N * (int(w1.size) + int(w2.size))
    flat_weights += [wout.astype(compute_dtype), bout.astype(jnp.float32),
                     gamma.astype(jnp.float32), beta.astype(jnp.float32),
                     wfc.astype(compute_dtype), bfc.astype(jnp.float32)]
    flops += 2 * N * (int(wout.size) + int(wfc.size))

    def row_spec(d):
        return pl.BlockSpec((tile_m, d), lambda i: (i, 0))

    def full_spec(a):
        # Grid-invariant block (constant index_map): Mosaic DMAs each weight once.
        return pl.BlockSpec(a.shape, lambda i: (0, 0))

    in_specs = [row_spec(d_split), row_spec(D)] + [full_spec(a) for a in flat_weights]
    out_spec = pl.BlockSpec((tile_m, num_classes), lambda i: (i, 0))

    weight_bytes = sum(int(a.size) * a.dtype.itemsize for a in flat_weights)
    io_bytes = (int(x.size) * x.dtype.itemsize + int(res.size) * res.dtype.itemsize
                + N * num_classes * jnp.dtype(out_dtype).itemsize)
    cost = pl.CostEstimate(flops=int(flops), transcendentals=int(N),
                           bytes_accessed=int(io_bytes + weight_bytes))

    # VMEM budget: 2x (double-buffered) streaming tiles + 2x weights + headroom,
    # never below the 32 MiB scoped default, capped below v7x's 64 MiB physical.
    tile_bytes = tile_m * (d_split * x.dtype.itemsize + D * res.dtype.itemsize
                           + num_classes * jnp.dtype(out_dtype).itemsize)
    vmem_est = 2 * tile_bytes + 2 * weight_bytes
    vmem_limit = int(min(max(32 * 2 ** 20, 2 * vmem_est), 56 * 2 ** 20))

    out = pl.pallas_call(
        make_kernel(len(ff), compute_dtype),
        out_shape=jax.ShapeDtypeStruct((N, num_classes), out_dtype),
        grid=(grid_m,),
        in_specs=in_specs,
        out_specs=out_spec,
        compiler_params=pltpu.CompilerParams(
            dimension_semantics=("parallel",),   # row tiles shard across TCs (v7x)
            vmem_limit_bytes=vmem_limit),
        cost_estimate=cost,
    )(x, res, *flat_weights)

    return out.reshape(B, S, num_classes)


# ---------------------------------------------------------------------------
# Pure-JAX reference (HIGHEST precision so the f32 Pallas path is comparable)
# ---------------------------------------------------------------------------
def reference_forward(feed_fwd_out, norm1_out, params):
    hi = jax.lax.Precision.HIGHEST
    ff, (wout, bout), (gamma, beta), (wfc, bfc) = params
    h = feed_fwd_out
    for (w1, b1, w2, b2) in ff:
        h = jnp.maximum(jnp.dot(h, w1, precision=hi) + b1[0], 0.0)
        h = jnp.maximum(jnp.dot(h, w2, precision=hi) + b2[0], 0.0)
    r = jnp.dot(h, wout, precision=hi) + bout[0] + norm1_out
    mean = jnp.mean(r, axis=-1, keepdims=True)
    var = jnp.mean((r - mean) ** 2, axis=-1, keepdims=True)
    normed = (r - mean) * jax.lax.rsqrt(var + 1e-5) * gamma[0] + beta[0]
    return jnp.dot(normed, wfc, precision=hi) + bfc[0]


# ---------------------------------------------------------------------------
if __name__ == "__main__":
    # Small config consistent with the module's structure.
    embed_dim = 32
    num_layers = 5
    expansion_factor = 0.8
    split_layer = 0
    num_classes = 1

    key = jax.random.PRNGKey(0)
    kp, kx, kr, kx2, kr2 = jax.random.split(key, 5)
    array, params = init_params(
        kp, embed_dim=embed_dim, num_layers=num_layers,
        expansion_factor=expansion_factor, split_layer=split_layer,
        num_classes=num_classes)

    d_split = array[split_layer + 1]            # feature dim of feed_fwd_out input

    # --- small config: single grid step --------------------------------------
    B, S = 2, 8
    feed_fwd_out = jax.random.normal(kx, (B, S, d_split), jnp.float32)
    norm1_out = jax.random.normal(kr, (B, S, embed_dim), jnp.float32)
    ref = reference_forward(feed_fwd_out, norm1_out, params)

    # f32 validation path.
    out_f32 = transformer_encoder_server_forward(
        feed_fwd_out, norm1_out, params, compute_dtype=jnp.float32)
    out_f32 = jax.block_until_ready(out_f32)
    assert out_f32.shape == (B, S, num_classes)
    assert jnp.allclose(out_f32, ref, atol=1e-3, rtol=1e-3), "f32 mismatch vs reference"

    # Default bf16-operand path (f32 accumulation in-kernel).
    out_bf = transformer_encoder_server_forward(feed_fwd_out, norm1_out, params)
    out_bf = jax.block_until_ready(out_bf)
    assert bool(jnp.all(jnp.isfinite(out_bf)))
    assert float(jnp.max(jnp.abs(out_bf - ref))) < 1.5e-1, "bf16 path diverged"

    # --- ragged config: >=2 grid steps + Pallas-clipped boundary block --------
    B2, S2 = 3, 50                                   # N = 150, not a tile multiple
    ffo2 = jax.random.normal(kx2, (B2, S2, d_split), jnp.float32)
    n1o2 = jax.random.normal(kr2, (B2, S2, embed_dim), jnp.float32)
    out2 = transformer_encoder_server_forward(
        ffo2, n1o2, params, compute_dtype=jnp.float32)
    out2 = jax.block_until_ready(out2)
    ref2 = reference_forward(ffo2, n1o2, params)
    assert jnp.allclose(out2, ref2, atol=1e-3, rtol=1e-3), "boundary-block mismatch"

    print("KERNEL_OK")
</pallas_src>

<mosaic_0001>
module attributes {stable_mosaic.version = 11 : i64} {
  func.func @kernel(%arg0: i32, %arg1: memref<16x26xf32, #tpu.memory_space<vmem>>, %arg2: memref<16x32xf32, #tpu.memory_space<vmem>>, %arg3: memref<26x26xf32, #tpu.memory_space<vmem>>, %arg4: memref<1x26xf32, #tpu.memory_space<vmem>>, %arg5: memref<26x21xf32, #tpu.memory_space<vmem>>, %arg6: memref<1x21xf32, #tpu.memory_space<vmem>>, %arg7: memref<21x21xf32, #tpu.memory_space<vmem>>, %arg8: memref<1x21xf32, #tpu.memory_space<vmem>>, %arg9: memref<21x17xf32, #tpu.memory_space<vmem>>, %arg10: memref<1x17xf32, #tpu.memory_space<vmem>>, %arg11: memref<17x17xf32, #tpu.memory_space<vmem>>, %arg12: memref<1x17xf32, #tpu.memory_space<vmem>>, %arg13: memref<17x14xf32, #tpu.memory_space<vmem>>, %arg14: memref<1x14xf32, #tpu.memory_space<vmem>>, %arg15: memref<14x14xf32, #tpu.memory_space<vmem>>, %arg16: memref<1x14xf32, #tpu.memory_space<vmem>>, %arg17: memref<14x11xf32, #tpu.memory_space<vmem>>, %arg18: memref<1x11xf32, #tpu.memory_space<vmem>>, %arg19: memref<11x32xf32, #tpu.memory_space<vmem>>, %arg20: memref<1x32xf32, #tpu.memory_space<vmem>>, %arg21: memref<1x32xf32, #tpu.memory_space<vmem>>, %arg22: memref<1x32xf32, #tpu.memory_space<vmem>>, %arg23: memref<32x1xf32, #tpu.memory_space<vmem>>, %arg24: memref<1x1xf32, #tpu.memory_space<vmem>>, %arg25: memref<16x1xf32, #tpu.memory_space<vmem>>) attributes {dimension_semantics = [#tpu.dimension_semantics<parallel>], iteration_bounds = array<i64: 1>, scalar_prefetch = 0 : i64, scratch_operands = 0 : i64, tpu.core_type = #tpu.core_type<tc>, window_params = [{transform_indices = @transform_0, window_bounds = array<i64: 16, 26>}, {transform_indices = @transform_1, window_bounds = array<i64: 16, 32>}, {pipeline_mode = #tpu.pipeline_mode<synchronous>, transform_indices = @transform_2, window_bounds = array<i64: 26, 26>}, {pipeline_mode = #tpu.pipeline_mode<synchronous>, transform_indices = @transform_3, window_bounds = array<i64: 1, 26>}, {pipeline_mode = #tpu.pipeline_mode<synchronous>, transform_indices = @transform_4, window_bounds = array<i64: 26, 21>}, {pipeline_mode = #tpu.pipeline_mode<synchronous>, transform_indices = @transform_5, window_bounds = array<i64: 1, 21>}, {pipeline_mode = #tpu.pipeline_mode<synchronous>, transform_indices = @transform_6, window_bounds = array<i64: 21, 21>}, {pipeline_mode = #tpu.pipeline_mode<synchronous>, transform_indices = @transform_7, window_bounds = array<i64: 1, 21>}, {pipeline_mode = #tpu.pipeline_mode<synchronous>, transform_indices = @transform_8, window_bounds = array<i64: 21, 17>}, {pipeline_mode = #tpu.pipeline_mode<synchronous>, transform_indices = @transform_9, window_bounds = array<i64: 1, 17>}, {pipeline_mode = #tpu.pipeline_mode<synchronous>, transform_indices = @transform_10, window_bounds = array<i64: 17, 17>}, {pipeline_mode = #tpu.pipeline_mode<synchronous>, transform_indices = @transform_11, window_bounds = array<i64: 1, 17>}, {pipeline_mode = #tpu.pipeline_mode<synchronous>, transform_indices = @transform_12, window_bounds = array<i64: 17, 14>}, {pipeline_mode = #tpu.pipeline_mode<synchronous>, transform_indices = @transform_13, window_bounds = array<i64: 1, 14>}, {pipeline_mode = #tpu.pipeline_mode<synchronous>, transform_indices = @transform_14, window_bounds = array<i64: 14, 14>}, {pipeline_mode = #tpu.pipeline_mode<synchronous>, transform_indices = @transform_15, window_bounds = array<i64: 1, 14>}, {pipeline_mode = #tpu.pipeline_mode<synchronous>, transform_indices = @transform_16, window_bounds = array<i64: 14, 11>}, {pipeline_mode = #tpu.pipeline_mode<synchronous>, transform_indices = @transform_17, window_bounds = array<i64: 1, 11>}, {pipeline_mode = #tpu.pipeline_mode<synchronous>, transform_indices = @transform_18, window_bounds = array<i64: 11, 32>}, {pipeline_mode = #tpu.pipeline_mode<synchronous>, transform_indices = @transform_19, window_bounds = array<i64: 1, 32>}, {pipeline_mode = #tpu.pipeline_mode<synchronous>, transform_indices = @transform_20, window_bounds = array<i64: 1, 32>}, {pipeline_mode = #tpu.pipeline_mode<synchronous>, transform_indices = @transform_21, window_bounds = array<i64: 1, 32>}, {pipeline_mode = #tpu.pipeline_mode<synchronous>, transform_indices = @transform_22, window_bounds = array<i64: 32, 1>}, {pipeline_mode = #tpu.pipeline_mode<synchronous>, transform_indices = @transform_23, window_bounds = array<i64: 1, 1>}, {transform_indices = @transform_24, window_bounds = array<i64: 16, 1>}]} {
    %c0 = arith.constant 0 : index
    %c0_0 = arith.constant 0 : index
    %0 = vector.load %arg1[%c0, %c0_0] : memref<16x26xf32, #tpu.memory_space<vmem>>, vector<16x26xf32>
    %c0_1 = arith.constant 0 : index
    %c0_2 = arith.constant 0 : index
    %1 = vector.load %arg3[%c0_1, %c0_2] : memref<26x26xf32, #tpu.memory_space<vmem>>, vector<26x26xf32>
    %cst = arith.constant dense<0.000000e+00> : vector<16x26xf32>
    %2 = tpu.matmul %0, %1, %cst {dimension_numbers = #tpu.dot_dimension_numbers<[1], [0], [0], [1], [0, 0, 1, 1], [], []>} : vector<16x26xf32>, vector<26x26xf32>, vector<16x26xf32> -> vector<16x26xf32>
    %c0_3 = arith.constant 0 : index
    %c0_4 = arith.constant 0 : index
    %3 = vector.load %arg4[%c0_3, %c0_4] : memref<1x26xf32, #tpu.memory_space<vmem>>, vector<1x26xf32>
    %4 = vector.broadcast %3 : vector<1x26xf32> to vector<16x26xf32>
    %5 = arith.addf %2, %4 : vector<16x26xf32>
    %cst_5 = arith.constant 0.000000e+00 : f32
    %6 = vector.broadcast %cst_5 : f32 to vector<16x26xf32>
    %7 = arith.maximumf %5, %6 : vector<16x26xf32>
    %c0_6 = arith.constant 0 : index
    %c0_7 = arith.constant 0 : index
    %8 = vector.load %arg5[%c0_6, %c0_7] : memref<26x21xf32, #tpu.memory_space<vmem>>, vector<26x21xf32>
    %cst_8 = arith.constant dense<0.000000e+00> : vector<16x21xf32>
    %9 = tpu.matmul %7, %8, %cst_8 {dimension_numbers = #tpu.dot_dimension_numbers<[1], [0], [0], [1], [0, 0, 1, 1], [], []>} : vector<16x26xf32>, vector<26x21xf32>, vector<16x21xf32> -> vector<16x21xf32>
    %c0_9 = arith.constant 0 : index
    %c0_10 = arith.constant 0 : index
    %10 = vector.load %arg6[%c0_9, %c0_10] : memref<1x21xf32, #tpu.memory_space<vmem>>, vector<1x21xf32>
    %11 = vector.broadcast %10 : vector<1x21xf32> to vector<16x21xf32>
    %12 = arith.addf %9, %11 : vector<16x21xf32>
    %cst_11 = arith.constant 0.000000e+00 : f32
    %13 = vector.broadcast %cst_11 : f32 to vector<16x21xf32>
    %14 = arith.maximumf %12, %13 : vector<16x21xf32>
    %c0_12 = arith.constant 0 : index
    %c0_13 = arith.constant 0 : index
    %15 = vector.load %arg7[%c0_12, %c0_13] : memref<21x21xf32, #tpu.memory_space<vmem>>, vector<21x21xf32>
    %cst_14 = arith.constant dense<0.000000e+00> : vector<16x21xf32>
    %16 = tpu.matmul %14, %15, %cst_14 {dimension_numbers = #tpu.dot_dimension_numbers<[1], [0], [0], [1], [0, 0, 1, 1], [], []>} : vector<16x21xf32>, vector<21x21xf32>, vector<16x21xf32> -> vector<16x21xf32>
    %c0_15 = arith.constant 0 : index
    %c0_16 = arith.constant 0 : index
    %17 = vector.load %arg8[%c0_15, %c0_16] : memref<1x21xf32, #tpu.memory_space<vmem>>, vector<1x21xf32>
    %18 = vector.broadcast %17 : vector<1x21xf32> to vector<16x21xf32>
    %19 = arith.addf %16, %18 : vector<16x21xf32>
    %cst_17 = arith.constant 0.000000e+00 : f32
    %20 = vector.broadcast %cst_17 : f32 to vector<16x21xf32>
    %21 = arith.maximumf %19, %20 : vector<16x21xf32>
    %c0_18 = arith.constant 0 : index
    %c0_19 = arith.constant 0 : index
    %22 = vector.load %arg9[%c0_18, %c0_19] : memref<21x17xf32, #tpu.memory_space<vmem>>, vector<21x17xf32>
    %cst_20 = arith.constant dense<0.000000e+00> : vector<16x17xf32>
    %23 = tpu.matmul %21, %22, %cst_20 {dimension_numbers = #tpu.dot_dimension_numbers<[1], [0], [0], [1], [0, 0, 1, 1], [], []>} : vector<16x21xf32>, vector<21x17xf32>, vector<16x17xf32> -> vector<16x17xf32>
    %c0_21 = arith.constant 0 : index
    %c0_22 = arith.constant 0 : index
    %24 = vector.load %arg10[%c0_21, %c0_22] : memref<1x17xf32, #tpu.memory_space<vmem>>, vector<1x17xf32>
    %25 = vector.broadcast %24 : vector<1x17xf32> to vector<16x17xf32>
    %26 = arith.addf %23, %25 : vector<16x17xf32>
    %cst_23 = arith.constant 0.000000e+00 : f32
    %27 = vector.broadcast %cst_23 : f32 to vector<16x17xf32>
    %28 = arith.maximumf %26, %27 : vector<16x17xf32>
    %c0_24 = arith.constant 0 : index
    %c0_25 = arith.constant 0 : index
    %29 = vector.load %arg11[%c0_24, %c0_25] : memref<17x17xf32, #tpu.memory_space<vmem>>, vector<17x17xf32>
    %cst_26 = arith.constant dense<0.000000e+00> : vector<16x17xf32>
    %30 = tpu.matmul %28, %29, %cst_26 {dimension_numbers = #tpu.dot_dimension_numbers<[1], [0], [0], [1], [0, 0, 1, 1], [], []>} : vector<16x17xf32>, vector<17x17xf32>, vector<16x17xf32> -> vector<16x17xf32>
    %c0_27 = arith.constant 0 : index
    %c0_28 = arith.constant 0 : index
    %31 = vector.load %arg12[%c0_27, %c0_28] : memref<1x17xf32, #tpu.memory_space<vmem>>, vector<1x17xf32>
    %32 = vector.broadcast %31 : vector<1x17xf32> to vector<16x17xf32>
    %33 = arith.addf %30, %32 : vector<16x17xf32>
    %cst_29 = arith.constant 0.000000e+00 : f32
    %34 = vector.broadcast %cst_29 : f32 to vector<16x17xf32>
    %35 = arith.maximumf %33, %34 : vector<16x17xf32>
    %c0_30 = arith.constant 0 : index
    %c0_31 = arith.constant 0 : index
    %36 = vector.load %arg13[%c0_30, %c0_31] : memref<17x14xf32, #tpu.memory_space<vmem>>, vector<17x14xf32>
    %cst_32 = arith.constant dense<0.000000e+00> : vector<16x14xf32>
    %37 = tpu.matmul %35, %36, %cst_32 {dimension_numbers = #tpu.dot_dimension_numbers<[1], [0], [0], [1], [0, 0, 1, 1], [], []>} : vector<16x17xf32>, vector<17x14xf32>, vector<16x14xf32> -> vector<16x14xf32>
    %c0_33 = arith.constant 0 : index
    %c0_34 = arith.constant 0 : index
    %38 = vector.load %arg14[%c0_33, %c0_34] : memref<1x14xf32, #tpu.memory_space<vmem>>, vector<1x14xf32>
    %39 = vector.broadcast %38 : vector<1x14xf32> to vector<16x14xf32>
    %40 = arith.addf %37, %39 : vector<16x14xf32>
    %cst_35 = arith.constant 0.000000e+00 : f32
    %41 = vector.broadcast %cst_35 : f32 to vector<16x14xf32>
    %42 = arith.maximumf %40, %41 : vector<16x14xf32>
    %c0_36 = arith.constant 0 : index
    %c0_37 = arith.constant 0 : index
    %43 = vector.load %arg15[%c0_36, %c0_37] : memref<14x14xf32, #tpu.memory_space<vmem>>, vector<14x14xf32>
    %cst_38 = arith.constant dense<0.000000e+00> : vector<16x14xf32>
    %44 = tpu.matmul %42, %43, %cst_38 {dimension_numbers = #tpu.dot_dimension_numbers<[1], [0], [0], [1], [0, 0, 1, 1], [], []>} : vector<16x14xf32>, vector<14x14xf32>, vector<16x14xf32> -> vector<16x14xf32>
    %c0_39 = arith.constant 0 : index
    %c0_40 = arith.constant 0 : index
    %45 = vector.load %arg16[%c0_39, %c0_40] : memref<1x14xf32, #tpu.memory_space<vmem>>, vector<1x14xf32>
    %46 = vector.broadcast %45 : vector<1x14xf32> to vector<16x14xf32>
    %47 = arith.addf %44, %46 : vector<16x14xf32>
    %cst_41 = arith.constant 0.000000e+00 : f32
    %48 = vector.broadcast %cst_41 : f32 to vector<16x14xf32>
    %49 = arith.maximumf %47, %48 : vector<16x14xf32>
    %c0_42 = arith.constant 0 : index
    %c0_43 = arith.constant 0 : index
    %50 = vector.load %arg17[%c0_42, %c0_43] : memref<14x11xf32, #tpu.memory_space<vmem>>, vector<14x11xf32>
    %cst_44 = arith.constant dense<0.000000e+00> : vector<16x11xf32>
    %51 = tpu.matmul %49, %50, %cst_44 {dimension_numbers = #tpu.dot_dimension_numbers<[1], [0], [0], [1], [0, 0, 1, 1], [], []>} : vector<16x14xf32>, vector<14x11xf32>, vector<16x11xf32> -> vector<16x11xf32>
    %c0_45 = arith.constant 0 : index
    %c0_46 = arith.constant 0 : index
    %52 = vector.load %arg18[%c0_45, %c0_46] : memref<1x11xf32, #tpu.memory_space<vmem>>, vector<1x11xf32>
    %53 = vector.broadcast %52 : vector<1x11xf32> to vector<16x11xf32>
    %54 = arith.addf %51, %53 : vector<16x11xf32>
    %cst_47 = arith.constant 0.000000e+00 : f32
    %55 = vector.broadcast %cst_47 : f32 to vector<16x11xf32>
    %56 = arith.maximumf %54, %55 : vector<16x11xf32>
    %c0_48 = arith.constant 0 : index
    %c0_49 = arith.constant 0 : index
    %57 = vector.load %arg19[%c0_48, %c0_49] : memref<11x32xf32, #tpu.memory_space<vmem>>, vector<11x32xf32>
    %cst_50 = arith.constant dense<0.000000e+00> : vector<16x32xf32>
    %58 = tpu.matmul %56, %57, %cst_50 {dimension_numbers = #tpu.dot_dimension_numbers<[1], [0], [0], [1], [0, 0, 1, 1], [], []>} : vector<16x11xf32>, vector<11x32xf32>, vector<16x32xf32> -> vector<16x32xf32>
    %c0_51 = arith.constant 0 : index
    %c0_52 = arith.constant 0 : index
    %59 = vector.load %arg20[%c0_51, %c0_52] : memref<1x32xf32, #tpu.memory_space<vmem>>, vector<1x32xf32>
    %60 = vector.broadcast %59 : vector<1x32xf32> to vector<16x32xf32>
    %61 = arith.addf %58, %60 : vector<16x32xf32>
    %c0_53 = arith.constant 0 : index
    %c0_54 = arith.constant 0 : index
    %62 = vector.load %arg2[%c0_53, %c0_54] : memref<16x32xf32, #tpu.memory_space<vmem>>, vector<16x32xf32>
    %63 = arith.addf %61, %62 : vector<16x32xf32>
    %cst_55 = arith.constant dense<0.000000e+00> : vector<16xf32>
    %64 = vector.multi_reduction <add>, %63, %cst_55 [1] : vector<16x32xf32> to vector<16xf32>
    %65 = vector.shape_cast %64 : vector<16xf32> to vector<16x1xf32>
    %cst_56 = arith.constant 3.200000e+01 : f32
    %66 = vector.broadcast %cst_56 : f32 to vector<16x1xf32>
    %67 = arith.divf %65, %66 : vector<16x1xf32>
    %68 = arith.mulf %63, %63 : vector<16x32xf32>
    %cst_57 = arith.constant dense<0.000000e+00> : vector<16xf32>
    %69 = vector.multi_reduction <add>, %68, %cst_57 [1] : vector<16x32xf32> to vector<16xf32>
    %70 = vector.shape_cast %69 : vector<16xf32> to vector<16x1xf32>
    %cst_58 = arith.constant 3.200000e+01 : f32
    %71 = vector.broadcast %cst_58 : f32 to vector<16x1xf32>
    %72 = arith.divf %70, %71 : vector<16x1xf32>
    %73 = arith.mulf %67, %67 : vector<16x1xf32>
    %74 = arith.subf %72, %73 : vector<16x1xf32>
    %75 = vector.broadcast %67 : vector<16x1xf32> to vector<16x32xf32>
    %76 = arith.subf %63, %75 : vector<16x32xf32>
    %cst_59 = arith.constant 9.99999974E-6 : f32
    %77 = vector.broadcast %cst_59 : f32 to vector<16x1xf32>
    %78 = arith.addf %74, %77 : vector<16x1xf32>
    %79 = math.rsqrt %78 : vector<16x1xf32>
    %80 = vector.broadcast %79 : vector<16x1xf32> to vector<16x32xf32>
    %81 = arith.mulf %76, %80 : vector<16x32xf32>
    %c0_60 = arith.constant 0 : index
    %c0_61 = arith.constant 0 : index
    %82 = vector.load %arg21[%c0_60, %c0_61] : memref<1x32xf32, #tpu.memory_space<vmem>>, vector<1x32xf32>
    %83 = vector.broadcast %82 : vector<1x32xf32> to vector<16x32xf32>
    %84 = arith.mulf %81, %83 : vector<16x32xf32>
    %c0_62 = arith.constant 0 : index
    %c0_63 = arith.constant 0 : index
    %85 = vector.load %arg22[%c0_62, %c0_63] : memref<1x32xf32, #tpu.memory_space<vmem>>, vector<1x32xf32>
    %86 = vector.broadcast %85 : vector<1x32xf32> to vector<16x32xf32>
    %87 = arith.addf %84, %86 : vector<16x32xf32>
    %c0_64 = arith.constant 0 : index
    %c0_65 = arith.constant 0 : index
    %88 = vector.load %arg23[%c0_64, %c0_65] : memref<32x1xf32, #tpu.memory_space<vmem>>, vector<32x1xf32>
    %cst_66 = arith.constant dense<0.000000e+00> : vector<16x1xf32>
    %89 = tpu.matmul %87, %88, %cst_66 {dimension_numbers = #tpu.dot_dimension_numbers<[1], [0], [0], [1], [0, 0, 1, 1], [], []>} : vector<16x32xf32>, vector<32x1xf32>, vector<16x1xf32> -> vector<16x1xf32>
    %c0_67 = arith.constant 0 : index
    %c0_68 = arith.constant 0 : index
    %90 = vector.load %arg24[%c0_67, %c0_68] : memref<1x1xf32, #tpu.memory_space<vmem>>, vector<1x1xf32>
    %91 = vector.broadcast %90 : vector<1x1xf32> to vector<16x1xf32>
    %92 = arith.addf %89, %91 : vector<16x1xf32>
    %c0_69 = arith.constant 0 : index
    %c0_70 = arith.constant 0 : index
    %93 = vector.load %arg25[%c0_69, %c0_70] : memref<16x1xf32, #tpu.memory_space<vmem>>, vector<16x1xf32>
    tpu.vector_store %arg25[%c0_69, %c0_70], %92 {strides = array<i32>} : memref<16x1xf32, #tpu.memory_space<vmem>>, vector<16x1xf32>,
    return
  }
  func.func @transform_0(%arg0: i32) -> (i32, i32) {
    %c0_i32 = arith.constant 0 : i32
    %c0_i32_0 = arith.constant 0 : i32
    return %arg0, %c0_i32 : i32, i32
  }
  func.func @transform_1(%arg0: i32) -> (i32, i32) {
    %c0_i32 = arith.constant 0 : i32
    %c0_i32_0 = arith.constant 0 : i32
    return %arg0, %c0_i32 : i32, i32
  }
  func.func @transform_2(%arg0: i32) -> (i32, i32) {
    %c0_i32 = arith.constant 0 : i32
    %c0_i32_0 = arith.constant 0 : i32
    %c0_i32_1 = arith.constant 0 : i32
    return %c0_i32, %c0_i32_0 : i32, i32
  }
  func.func @transform_3(%arg0: i32) -> (i32, i32) {
    %c0_i32 = arith.constant 0 : i32
    %c0_i32_0 = arith.constant 0 : i32
    %c0_i32_1 = arith.constant 0 : i32
    return %c0_i32, %c0_i32_0 : i32, i32
  }
  func.func @transform_4(%arg0: i32) -> (i32, i32) {
    %c0_i32 = arith.constant 0 : i32
    %c0_i32_0 = arith.constant 0 : i32
    %c0_i32_1 = arith.constant 0 : i32
    return %c0_i32, %c0_i32_0 : i32, i32
  }
  func.func @transform_5(%arg0: i32) -> (i32, i32) {
    %c0_i32 = arith.constant 0 : i32
    %c0_i32_0 = arith.constant 0 : i32
    %c0_i32_1 = arith.constant 0 : i32
    return %c0_i32, %c0_i32_0 : i32, i32
  }
  func.func @transform_6(%arg0: i32) -> (i32, i32) {
    %c0_i32 = arith.constant 0 : i32
    %c0_i32_0 = arith.constant 0 : i32
    %c0_i32_1 = arith.constant 0 : i32
    return %c0_i32, %c0_i32_0 : i32, i32
  }
  func.func @transform_7(%arg0: i32) -> (i32, i32) {
    %c0_i32 = arith.constant 0 : i32
    %c0_i32_0 = arith.constant 0 : i32
    %c0_i32_1 = arith.constant 0 : i32
    return %c0_i32, %c0_i32_0 : i32, i32
  }
  func.func @transform_8(%arg0: i32) -> (i32, i32) {
    %c0_i32 = arith.constant 0 : i32
    %c0_i32_0 = arith.constant 0 : i32
    %c0_i32_1 = arith.constant 0 : i32
    return %c0_i32, %c0_i32_0 : i32, i32
  }
  func.func @transform_9(%arg0: i32) -> (i32, i32) {
    %c0_i32 = arith.constant 0 : i32
    %c0_i32_0 = arith.constant 0 : i32
    %c0_i32_1 = arith.constant 0 : i32
    return %c0_i32, %c0_i32_0 : i32, i32
  }
  func.func @transform_10(%arg0: i32) -> (i32, i32) {
    %c0_i32 = arith.constant 0 : i32
    %c0_i32_0 = arith.constant 0 : i32
    %c0_i32_1 = arith.constant 0 : i32
    return %c0_i32, %c0_i32_0 : i32, i32
  }
  func.func @transform_11(%arg0: i32) -> (i32, i32) {
    %c0_i32 = arith.constant 0 : i32
    %c0_i32_0 = arith.constant 0 : i32
    %c0_i32_1 = arith.constant 0 : i32
    return %c0_i32, %c0_i32_0 : i32, i32
  }
  func.func @transform_12(%arg0: i32) -> (i32, i32) {
    %c0_i32 = arith.constant 0 : i32
    %c0_i32_0 = arith.constant 0 : i32
    %c0_i32_1 = arith.constant 0 : i32
    return %c0_i32, %c0_i32_0 : i32, i32
  }
  func.func @transform_13(%arg0: i32) -> (i32, i32) {
    %c0_i32 = arith.constant 0 : i32
    %c0_i32_0 = arith.constant 0 : i32
    %c0_i32_1 = arith.constant 0 : i32
    return %c0_i32, %c0_i32_0 : i32, i32
  }
  func.func @transform_14(%arg0: i32) -> (i32, i32) {
    %c0_i32 = arith.constant 0 : i32
    %c0_i32_0 = arith.constant 0 : i32
    %c0_i32_1 = arith.constant 0 : i32
    return %c0_i32, %c0_i32_0 : i32, i32
  }
  func.func @transform_15(%arg0: i32) -> (i32, i32) {
    %c0_i32 = arith.constant 0 : i32
    %c0_i32_0 = arith.constant 0 : i32
    %c0_i32_1 = arith.constant 0 : i32
    return %c0_i32, %c0_i32_0 : i32, i32
  }
  func.func @transform_16(%arg0: i32) -> (i32, i32) {
    %c0_i32 = arith.constant 0 : i32
    %c0_i32_0 = arith.constant 0 : i32
    %c0_i32_1 = arith.constant 0 : i32
    return %c0_i32, %c0_i32_0 : i32, i32
  }
  func.func @transform_17(%arg0: i32) -> (i32, i32) {
    %c0_i32 = arith.constant 0 : i32
    %c0_i32_0 = arith.constant 0 : i32
    %c0_i32_1 = arith.constant 0 : i32
    return %c0_i32, %c0_i32_0 : i32, i32
  }
  func.func @transform_18(%arg0: i32) -> (i32, i32) {
    %c0_i32 = arith.constant 0 : i32
    %c0_i32_0 = arith.constant 0 : i32
    %c0_i32_1 = arith.constant 0 : i32
    return %c0_i32, %c0_i32_0 : i32, i32
  }
  func.func @transform_19(%arg0: i32) -> (i32, i32) {
    %c0_i32 = arith.constant 0 : i32
    %c0_i32_0 = arith.constant 0 : i32
    %c0_i32_1 = arith.constant 0 : i32
    return %c0_i32, %c0_i32_0 : i32, i32
  }
  func.func @transform_20(%arg0: i32) -> (i32, i32) {
    %c0_i32 = arith.constant 0 : i32
    %c0_i32_0 = arith.constant 0 : i32
    %c0_i32_1 = arith.constant 0 : i32
    return %c0_i32, %c0_i32_0 : i32, i32
  }
  func.func @transform_21(%arg0: i32) -> (i32, i32) {
    %c0_i32 = arith.constant 0 : i32
    %c0_i32_0 = arith.constant 0 : i32
    %c0_i32_1 = arith.constant 0 : i32
    return %c0_i32, %c0_i32_0 : i32, i32
  }
  func.func @transform_22(%arg0: i32) -> (i32, i32) {
    %c0_i32 = arith.constant 0 : i32
    %c0_i32_0 = arith.constant 0 : i32
    %c0_i32_1 = arith.constant 0 : i32
    return %c0_i32, %c0_i32_0 : i32, i32
  }
  func.func @transform_23(%arg0: i32) -> (i32, i32) {
    %c0_i32 = arith.constant 0 : i32
    %c0_i32_0 = arith.constant 0 : i32
    %c0_i32_1 = arith.constant 0 : i32
    return %c0_i32, %c0_i32_0 : i32, i32
  }
  func.func @transform_24(%arg0: i32) -> (i32, i32) {
    %c0_i32 = arith.constant 0 : i32
    %c0_i32_0 = arith.constant 0 : i32
    return %arg0, %c0_i32 : i32, i32
  }
}

</mosaic_0001>

<bundles_post_ra>
// kernel: tpu_custom_call.1
= control target key start
LH: loop header
LB: loop body
LE: loop exit
PB: predicated region body
PF: predicated region fallthrough
CT: control target
= control target key end

     0   :  { %s1928_s0 = inlined_call_operand.hbm [shape: f32[16,26], index: 0, kind: input, shape index: {}]   ;;  %s1929_s1 = inlined_call_operand.hbm [shape: f32[16,32], index: 1, kind: input, shape index: {}]   ;;  %s1930_s2 = inlined_call_operand.vmem [shape: f32[26,26], index: 2, kind: input, shape index: {}]   ;;  %s1931_s3 = inlined_call_operand.hbm [shape: f32[1,26], index: 3, kind: input, shape index: {}]   ;;  %s1932_s4 = inlined_call_operand.vmem [shape: f32[26,21], index: 4, kind: input, shape index: {}]   ;;  %s1933_s5 = inlined_call_operand.vmem [shape: f32[1,21], index: 5, kind: input, shape index: {}]   ;;  %s1934_s6 = inlined_call_operand.vmem [shape: f32[21,21], index: 6, kind: input, shape index: {}]   ;;  %s1935_s7 = inlined_call_operand.vmem [shape: f32[1,21], index: 7, kind: input, shape index: {}]   ;;  %s1936_s8 = inlined_call_operand.vmem [shape: f32[21,17], index: 8, kind: input, shape index: {}]   ;;  %s1937_s9 = inlined_call_operand.hbm [shape: f32[1,17], index: 9, kind: input, shape index: {}]   ;;  %s1938_s10 = inlined_call_operand.vmem [shape: f32[17,17], index: 10, kind: input, shape index: {}]   ;;  %s1939_s11 = inlined_call_operand.hbm [shape: f32[1,17], index: 11, kind: input, shape index: {}]   ;;  %s1940_s12 = inlined_call_operand.vmem [shape: f32[17,14], index: 12, kind: input, shape index: {}]   ;;  %s1941_s13 = inlined_call_operand.vmem [shape: f32[1,14], index: 13, kind: input, shape index: {}]   ;;  %s1942_s14 = inlined_call_operand.vmem [shape: f32[14,14], index: 14, kind: input, shape index: {}]   ;;  %s1943_s15 = inlined_call_operand.vmem [shape: f32[1,14], index: 15, kind: input, shape index: {}]   ;;  %s1944_s16 = inlined_call_operand.vmem [shape: f32[14,11], index: 16, kind: input, shape index: {}]   ;;  %s1945_s17 = inlined_call_operand.vmem [shape: f32[1,11], index: 17, kind: input, shape index: {}]   ;;  %s1946_s18 = inlined_call_operand.vmem [shape: f32[11,32], index: 18, kind: input, shape index: {}]   ;;  %s1947_s19 = inlined_call_operand.vmem [shape: f32[1,32], index: 19, kind: input, shape index: {}]   ;;  %s1948_s20 = inlined_call_operand.vmem [shape: f32[1,32], index: 20, kind: input, shape index: {}]   ;;  %s1949_s21 = inlined_call_operand.vmem [shape: f32[1,32], index: 21, kind: input, shape index: {}]   ;;  %s1950_s22 = inlined_call_operand.vmem [shape: f32[32,1], index: 22, kind: input, shape index: {}]   ;;  %s1951_s23 = inlined_call_operand.<no memory space> [shape: f32[1,1], index: 23, kind: input, shape index: {}]   ;;  %s1952_s24 = inlined_call_operand.vmem [shape: f32[16,1], index: 24, kind: output, shape index: {}]  }
   0x1   :  { %1961 = sst [smem:[#allocation14_spill]] %s1928_s0  ;;  %v29_v0 = vstv %s1951_s23 }
   0x2   :  { %1962 = sst [smem:[#allocation15_spill]] %s1929_s1  ;;  %30 = vst [vmem:[#allocation2] sm:$0x1] %v29_v0 }
   0x3   :  { %1963 = sst [smem:[#allocation16_spill]] %s1930_s2 }
   0x4   :  { %1964 = sst [smem:[#allocation17_spill]] %s1931_s3 }
   0x5   :  { %1965 = sst [smem:[#allocation18_spill]] %s1932_s4 }
   0x6   :  { %1966 = sst [smem:[#allocation19_spill]] %s1933_s5 }
   0x7   :  { %1967 = sst [smem:[#allocation20_spill]] %s1934_s6 }
   0x8   :  { %1968 = sst [smem:[#allocation21_spill]] %s1935_s7 }
   0x9   :  { %1969 = sst [smem:[#allocation22_spill]] %s1936_s8 }
   0xa   :  { %31 = vsyncpa [#allocation4], 0 }
   0xb   :  { %32 = vsyncpa [#allocation6], 0 }
   0xc   :  { %33 = vsyncpa [#allocation9], 0  ;;  %s1541_s27 = smov [#allocation5]   ;;  %s1542_s6 = smov [#allocation8]  }
   0xd   :  { %s51_s28 = sshll.u32 %s1541_s27, 4  ;;  %s86_s2 = sshll.u32 %s1542_s6, 4  ;;  %s52_s28 = int_to_ptr.vmem [resolvable:$true] %s51_s28  ;;  %s1677_s2 = int_to_ptr.vmem [resolvable:$true] %s86_s2 }
   0xe   :  { %s1970_s7 = sld [smem:[#allocation15_spill]] }
  0x14   :  { %s1425_s30 = scalar_lea.hbm %s1970_s7, 256 }
  0x15   :  { %p1426_p0 = scmp.ne.s32.totalorder %s1970_s7, %s1425_s30  ;;  %p1429_p1 = scmp.lt.u32.totalorder %s1425_s30, %s1970_s7 }
  0x17   :  { %p1431_p2 = pnand %p1429_p1, %p1426_p0 }
  0x19   :  { %1434 = shalt.err (!%p1431_p2)
}
  0x1a   :  { %s1435_s4 = scalar_lea.vmem %s52_s28, 256  ;;  %p1440_p4 = scmp.lt.s32.totalorder %s52_s28, %s52_s28 }
  0x1b   :  { %p1436_p3 = scmp.ne.s32.totalorder %s52_s28, %s1435_s4  ;;  %p1441_p5 = scmp.lt.s32.totalorder %s1435_s4, %s1435_s4 }
  0x1d   :  { %p1442_p6 = por %p1441_p5, %p1440_p4 }
  0x1f   :  { %p1443_p7 = pnand %p1442_p6, %p1436_p3 }
  0x21   :  { %1446 = shalt.err (!%p1443_p7)
}
  0x22   :  { %s1960_s1 = smov 128   ;;  %s1544_s5 = smov 8  }
  0x23   :  { %57 = dma.hbm_to_vmem [thread:$0]  %s1970_s7, 256, %s52_s28, [#allocation6], %s1960_s1, %s1960_s1, %s1544_s5  }
  0x24   :  { %s1447_s0 = scalar_lea.hbm %s1937_s9, 16 }
  0x25   :  { %p1448_p8 = scmp.ne.s32.totalorder %s1937_s9, %s1447_s0  ;;  %p1451_p9 = scmp.lt.u32.totalorder %s1447_s0, %s1937_s9 }
  0x27   :  { %p1453_p10 = pnand %p1451_p9, %p1448_p8 }
  0x29   :  { %1456 = shalt.err (!%p1453_p10)
}
  0x2a   :  { %s1457_s8 = scalar_lea.vmem %s1677_s2, 16  ;;  %s1461_s28 = scalar_lea.vmem %s1677_s2, 32 }
  0x2b   :  { %p1458_p11 = scmp.ne.s32.totalorder %s1677_s2, %s1457_s8  ;;  %p1462_p12 = scmp.lt.s32.totalorder %s1677_s2, %s1677_s2 }
  0x2c   :  { %p1463_p13 = scmp.lt.s32.totalorder %s1461_s28, %s1457_s8 }
  0x2e   :  { %p1464_p0 = por %p1463_p13, %p1462_p12 }
  0x30   :  { %p1465_p1 = pnand %p1464_p0, %p1458_p11 }
  0x32   :  { %1468 = shalt.err (!%p1465_p1)
}
  0x33   :  { %89 = dma.hbm_to_vmem [thread:$0]  %s1937_s9, 16, %s1677_s2, [#allocation9]  }
  0x34   :  { %s1545_s26 = smov [#allocation3]   ;;  %s1546_s6 = smov [#allocation7]  }
  0x35   :  { %s39_s27 = sshll.u32 %s1545_s26, 4  ;;  %s66_s29 = sshll.u32 %s1546_s6, 4  ;;  %s40_s27 = int_to_ptr.vmem [resolvable:$true] %s39_s27  ;;  %s67_s29 = int_to_ptr.vmem [resolvable:$true] %s66_s29 }
  0x36   :  { %s1971_s3 = sld [smem:[#allocation14_spill]] }
  0x3c   :  { %s1469_s25 = scalar_lea.hbm %s1971_s3, 256 }
  0x3d   :  { %p1470_p2 = scmp.ne.s32.totalorder %s1971_s3, %s1469_s25  ;;  %p1473_p3 = scmp.lt.u32.totalorder %s1469_s25, %s1971_s3 }
  0x3f   :  { %p1475_p4 = pnand %p1473_p3, %p1470_p2 }
  0x41   :  { %1478 = shalt.err (!%p1475_p4)
}
  0x42   :  { %s1479_s9 = scalar_lea.vmem %s40_s27, 256  ;;  %p1484_p6 = scmp.lt.s32.totalorder %s40_s27, %s40_s27 }
  0x43   :  { %p1480_p5 = scmp.ne.s32.totalorder %s40_s27, %s1479_s9  ;;  %p1485_p7 = scmp.lt.s32.totalorder %s1479_s9, %s1479_s9 }
  0x45   :  { %p1486_p8 = por %p1485_p7, %p1484_p6 }
  0x47   :  { %p1487_p9 = pnand %p1486_p8, %p1480_p5 }
  0x49   :  { %1490 = shalt.err (!%p1487_p9)
}
  0x4a   :  { %s1972_s2 = smov 128   ;;  %s1973_s1 = sld [smem:[#allocation17_spill]] }
  0x4b   :  { %45 = dma.hbm_to_vmem [thread:$0]  %s1971_s3, 256, %s40_s27, [#allocation4], %s1972_s2, %s1972_s2, %s1544_s5  }
  0x50   :  { %s1491_s0 = scalar_lea.hbm %s1973_s1, 16 }
  0x51   :  { %p1492_p10 = scmp.ne.s32.totalorder %s1973_s1, %s1491_s0  ;;  %p1495_p11 = scmp.lt.u32.totalorder %s1491_s0, %s1973_s1 }
  0x53   :  { %p1497_p12 = pnand %p1495_p11, %p1492_p10 }
  0x55   :  { %1500 = shalt.err (!%p1497_p12)
}
  0x56   :  { %s1501_s28 = scalar_lea.vmem %s67_s29, 16  ;;  %s1505_s9 = scalar_lea.vmem %s67_s29, 32 }
  0x57   :  { %p1502_p13 = scmp.ne.s32.totalorder %s67_s29, %s1501_s28  ;;  %p1506_p0 = scmp.lt.s32.totalorder %s67_s29, %s67_s29 }
  0x58   :  { %p1507_p1 = scmp.lt.s32.totalorder %s1505_s9, %s1501_s28 }
  0x5a   :  { %p1508_p2 = por %p1507_p1, %p1506_p0 }
  0x5c   :  { %p1509_p3 = pnand %p1508_p2, %p1502_p13 }
  0x5e   :  { %1512 = shalt.err (!%p1509_p3)
}
  0x5f   :  { %69 = dma.hbm_to_vmem [thread:$0]  %s1973_s1, 16, %s67_s29, [#allocation6]  }
  0x60   :  { %s1547_s3 = smov [#allocation10]   ;;  %s1513_s26 = scalar_lea.hbm %s1939_s11, 16 }
  0x61   :  { %s98_s2 = sshll.u32 %s1547_s3, 4  ;;  %p1514_p4 = scmp.ne.s32.totalorder %s1939_s11, %s1513_s26  ;;  %s99_s2 = int_to_ptr.vmem [resolvable:$true] %s98_s2 }
  0x62   :  { %p1517_p5 = scmp.lt.u32.totalorder %s1513_s26, %s1939_s11 }
  0x64   :  { %p1519_p6 = pnand %p1517_p5, %p1514_p4 }
  0x66   :  { %1522 = shalt.err (!%p1519_p6)
}
  0x67   :  { %s1523_s23 = scalar_lea.vmem %s99_s2, 16  ;;  %s1527_s29 = scalar_lea.vmem %s99_s2, 32 }
  0x68   :  { %p1524_p7 = scmp.ne.s32.totalorder %s99_s2, %s1523_s23  ;;  %p1528_p8 = scmp.lt.s32.totalorder %s99_s2, %s99_s2 }
  0x69   :  { %p1529_p9 = scmp.lt.s32.totalorder %s1527_s29, %s1523_s23 }
  0x6b   :  { %p1530_p10 = por %p1529_p9, %p1528_p8 }
  0x6d   :  { %p1531_p11 = pnand %p1530_p10, %p1524_p7 }
  0x6f   :  { %1534 = shalt.err (!%p1531_p11)
}
  0x70   :  { %101 = dma.hbm_to_vmem [thread:$0]  %s1939_s11, 16, %s99_s2, [#allocation9]  }
  0x71   :  { %1535 = dma.done.wait [#allocation4], 256  }
  0x72   :  { %1536 = vsyncadd [#allocation4], 4294967040 }
  0x73   :  { %1537 = dma.done.wait [#allocation6], 272  }
  0x74   :  { %1538 = vsyncadd [#allocation6], 4294967024 }
  0x75   :  { %1539 = dma.done.wait [#allocation9], 32  }
  0x76   :  { %1540 = vsyncadd [#allocation9], 4294967264  ;;  %vm161_vm0 = vcmask 1041408   ;;  %vm154_vm1 = vcmask 211968   ;;  %s1974_s5 = sld [smem:[#allocation16_spill]]  ;;  %v141_v6 = vld [vmem:[#allocation3] sm:$0xff] }
  0x77   :  { %vm1548_vm2 = vmmov 1   ;;  %1269 = vmatprep.mubr.msk.f32.mxu0 %vm154_vm1, %v141_v6  ;;  %s1977_s0 = sld [smem:[#allocation18_spill]]  ;;  %v142_v12 = vld [vmem:[#allocation3 + $0x8] sm:$0xff]  ;;  %v1170_v16 = vld [vmem:[#allocation7] ss:$0 sm:$0xff]  ;;  %vm356_vm4 = vcmask 1044480  }
  0x78   :  { %vm1764_vm3 = vmpackc.low %vm161_vm0, %vm1548_vm2  ;;  %s1979_s26 = sld [smem:[#allocation19_spill]]  ;;  %vm349_vm5 = vcmask 171008   ;;  %s1980_s30 = sld [smem:[#allocation22_spill]]  ;;  %v533_v45 = vld [vmem:[%s1938_s10] sm:$0xff]  ;;  %v534_v46 = vld [vmem:[%s1938_s10 + $0x8] sm:$0xff]  ;;  %vm550_vm6 = vcmask 1040384  }
  0x79   :  { %s1981_s9 = sld [smem:[#allocation21_spill]]  ;;  %v1379_v47 = vpack.c.bf16 %v534_v46, %v533_v45  ;;  %v535_v48 = vld [vmem:[%s1938_s10 + $0x10] sm:$0x1]  ;;  %v1182_v49 = vld [vmem:[#allocation8] ss:$0 sm:$0xff]  ;;  %vm543_vm7 = vcmask 138240  }
  0x7a   :  { %v631_v56 = vld [vmem:[%s1940_s12] sm:$0xff]  ;;  %v632_v57 = vld [vmem:[%s1940_s12 + $0x8] sm:$0xff]  ;;  %v633_v59 = vld [vmem:[%s1940_s12 + $0x10] sm:$0x1]  ;;  %vm743_vm8 = vcmask 1045504   ;;  %vm736_vm10 = vcmask 113664  }
  0x7b   :  { %v1383_v58 = vpack.c.bf16 %v632_v57, %v631_v56  ;;  %v1186_v60 = vld [vmem:[#allocation10] ss:$0 sm:$0xff]  ;;  %vm1857_vm9 = vmpackc.low %vm743_vm8, %vm1548_vm2  ;;  %vm935_vm11 = vcmask 1042432   ;;  %vm928_vm13 = vcmask 89088   ;;  %vm1018_vm14 = vcmask 261120  }
  0x7c   :  { %v143_v1 = vld [vmem:[%s1974_s5] sm:$0xff]  ;;  %v144_v2 = vld [vmem:[%s1974_s5 + $0x8] sm:$0xff]  ;;  %v145_v3 = vld [vmem:[%s1974_s5 + $0x10] sm:$0xff]  ;;  %vm1160_vm15 = vcmask 7168  }
  0x7d   :  { %v1351_v4 = vpack.c.bf16 %v144_v2, %v143_v1  ;;  %v146_v5 = vld [vmem:[%s1974_s5 + $0x18] sm:$0x3]  ;;  %v242_v9 = vld [vmem:[%s1977_s0] sm:$0xff]  ;;  %v243_v10 = vld [vmem:[%s1977_s0 + $0x8] sm:$0xff]  ;;  %s1978_s5 = sld [smem:[#allocation20_spill]] }
  0x7e   :  { %v1355_v7 = vpack.c.bf16 %v146_v5, %v145_v3  ;;  %v1361_v11 = vpack.c.bf16 %v243_v10, %v242_v9  ;;  %v244_v13 = vld [vmem:[%s1977_s0 + $0x10] sm:$0xff]  ;;  %v245_v14 = vld [vmem:[%s1977_s0 + $0x18] sm:$0x3]  ;;  %v1174_v27 = vld [vmem:[%s1979_s26] ss:$0 sm:$0xff] }
  0x7f   :  { %1352 = vmatprep.subr.bf16.mxu0 %v1351_v4  ;;  %v1365_v15 = vpack.c.bf16 %v245_v14, %v244_v13  ;;  %v437_v34 = vld [vmem:[%s1980_s30] sm:$0xff]  ;;  %v438_v35 = vld [vmem:[%s1980_s30 + $0x8] sm:$0xff]  ;;  %v439_v37 = vld [vmem:[%s1980_s30 + $0x10] sm:$0x1f] }
  0x80   :  { %1354 = vmatpush3.bf16.msra.mxu0 %v1351_v4  ;;  %1362 = vmatprep.subr.bf16.mxu1 %v1361_v11  ;;  %v1375_v36 = vpack.c.bf16 %v438_v35, %v437_v34  ;;  %v1178_v38 = vld [vmem:[%s1981_s9] ss:$0 sm:$0xff]  ;;  %v728_v4 = vld [vmem:[%s1942_s14 + $0x8] sm:$0x3f]  ;;  %vm1400_vm12 = vmpackc.low %vm935_vm11, %vm1548_vm2 }
  0x81   :  { %1357 = vmatprep.subr.msk.bf16.mxu0 %vm1764_vm3, %v1355_v7  ;;  %1364 = vmatpush3.bf16.msra.mxu1 %v1361_v11  ;;  %v727_v3 = vld [vmem:[%s1942_s14] sm:$0xff] }
  0x82   :  { %1367 = vmatprep.subr.msk.bf16.mxu1 %vm1764_vm3, %v1365_v15  ;;  %v1387_v5 = vpack.c.bf16 %v728_v4, %v727_v3  ;;  %v824_v14 = vld [vmem:[%s1944_s16] sm:$0xff] }
  0x83   :  { %v339_v23 = vld [vmem:[%s1978_s5] sm:$0xff]  ;;  %v340_v24 = vld [vmem:[%s1978_s5 + $0x8] sm:$0xff]  ;;  %v341_v26 = vld [vmem:[%s1978_s5 + $0x10] sm:$0x1f] }
  0x84   :  { %1360 = vmatpush3.bf16.msk.msra.mxu0 %vm1764_vm3, %v1355_v7  ;;  %v1371_v25 = vpack.c.bf16 %v340_v24, %v339_v23  ;;  %v1190_v7 = vld [vmem:[%s1941_s13] ss:$0 sm:$0xff] }
  0x85   :  { %1370 = vmatpush3.bf16.msk.msra.mxu1 %vm1764_vm3, %v1365_v15  ;;  %v825_v15 = vld [vmem:[%s1944_s16 + $0x8] sm:$0x3f]  ;;  %v919_v24 = vld [vmem:[%s1946_s18] sm:$0xff] }
  0x86   :  { %1372 = vmatprep.subr.bf16.mxu0 %v1371_v25  ;;  %1376 = vmatprep.subr.bf16.mxu1 %v1375_v36  ;;  %v1202_v34 = vld [vmem:[%s1947_s19] ss:$0 sm:$0xff] }
  0x87   :  { %1270 = vmatmul.mubr.msk.f32.vlgmr.msra.gmra.mrb[0].mxu0 %vm154_vm1, %v142_v12 }
  0x88   :  { %1374 = vmatpush3.bf16.msra.mxu0 %v1371_v25  ;;  %v920_v25 = vld [vmem:[%s1946_s18 + $0x8] sm:$0x7] }
  0x89   :  { %1287 = vmatprep.subr.msk.mxu0 %vm356_vm4, %v341_v26 }
  0x8c   :  { %1288 = vmatpush3.msk.msra.mxu0 %vm356_vm4, %v341_v26  ;;  %v1399_v26 = vpack.c.bf16 %v920_v25, %v919_v24 }
  0x8d   :  { %1380 = vmatprep.subr.bf16.mxu0 %v1379_v47 }
 0x15a   :  { %v1271_v17 = vpop.f32.mrb[0].mxu0 }
 0x15b   :  { %v237_v18 = vadd.f32 %v1271_v17, %v1170_v16  ;;  %v231_v19 = vpop.f32.mrb[1].mxu0  ;;  %v1194_v17 = vld [vmem:[%s1943_s15] ss:$0 sm:$0xff] }
 0x15c   :  { %v232_v20 = vadd.f32 %v1170_v16, %v231_v19  ;;  %v1393_v16 = vpack.c.bf16 %v825_v15, %v824_v14 }
 0x15d   :  { %v241_v22 = vmax.f32 %v237_v18, 0.0 }
 0x15e   :  { %v240_v21 = vmax.f32 %v232_v20, 0.0 }
 0x160   :  { %1280 = vmatprep.mubr.msk.f32.mxu1 %vm154_vm1, %v240_v21 }
 0x161   :  { %1281 = vmatmul.mubr.msk.f32.vlgmr.msra.gmra.mrb[0].mxu1 %vm154_vm1, %v241_v22 }
 0x162   :  { %1378 = vmatpush3.bf16.msra.mxu1 %v1375_v36 }
 0x163   :  { %1296 = vmatprep.subr.msk.mxu1 %vm356_vm4, %v439_v37 }
 0x166   :  { %1297 = vmatpush3.msk.msra.mxu1 %vm356_vm4, %v439_v37  ;;  %v1015_v37 = vld [vmem:[#allocation5 + $0x8] sm:$0xff] }
 0x167   :  { %1384 = vmatprep.subr.bf16.mxu1 %v1383_v58 }
 0x234   :  { %v1282_v28 = vpop.f32.mrb[0].mxu1 }
 0x235   :  { %v334_v29 = vadd.f32 %v1282_v28, %v1174_v27  ;;  %v328_v30 = vpop.f32.mrb[1].mxu1 }
 0x236   :  { %v329_v31 = vadd.f32 %v1174_v27, %v328_v30  ;;  %v1198_v27 = vld [vmem:[%s1945_s17] ss:$0 sm:$0xff] }
 0x237   :  { %v338_v33 = vmax.f32 %v334_v29, 0.0 }
 0x238   :  { %v337_v32 = vmax.f32 %v329_v31, 0.0 }
 0x23a   :  { %1289 = vmatprep.mubr.msk.f32.mxu0 %vm349_vm5, %v337_v32 }
 0x23b   :  { %1290 = vmatmul.mubr.msk.f32.vlgmr.msra.gmra.mrb[2].mxu0 %vm349_vm5, %v338_v33 }
 0x23c   :  { %1382 = vmatpush3.bf16.msra.mxu0 %v1379_v47 }
 0x23d   :  { %1305 = vmatprep.subr.msk.mxu0 %vm550_vm6, %v535_v48 }
 0x240   :  { %1306 = vmatpush3.msk.msra.mxu0 %vm550_vm6, %v535_v48 }
 0x241   :  { %1389 = vmatprep.subr.msk.bf16.mxu0 %vm1857_vm9, %v1387_v5 }
 0x30e   :  { %v1291_v39 = vpop.f32.mrb[2].mxu0 }
 0x30f   :  { %v432_v40 = vadd.f32 %v1291_v39, %v1178_v38  ;;  %v426_v41 = vpop.f32.mrb[3].mxu0  ;;  %v1014_v39 = vld [vmem:[#allocation5] sm:$0xff] }
 0x310   :  { %v427_v42 = vadd.f32 %v1178_v38, %v426_v41 }
 0x311   :  { %v436_v44 = vmax.f32 %v432_v40, 0.0 }
 0x312   :  { %v435_v43 = vmax.f32 %v427_v42, 0.0 }
 0x314   :  { %1298 = vmatprep.mubr.msk.f32.mxu1 %vm349_vm5, %v435_v43 }
 0x315   :  { %1299 = vmatmul.mubr.msk.f32.vlgmr.msra.gmra.mrb[2].mxu1 %vm349_vm5, %v436_v44 }
 0x316   :  { %1386 = vmatpush3.bf16.msra.mxu1 %v1383_v58 }
 0x317   :  { %1314 = vmatprep.subr.msk.mxu1 %vm550_vm6, %v633_v59 }
 0x31a   :  { %1315 = vmatpush3.msk.msra.mxu1 %vm550_vm6, %v633_v59 }
 0x31b   :  { %1395 = vmatprep.subr.msk.bf16.mxu1 %vm1857_vm9, %v1393_v16 }
 0x3e8   :  { %v1300_v50 = vpop.f32.mrb[2].mxu1 }
 0x3e9   :  { %v528_v51 = vadd.f32 %v1300_v50, %v1182_v49  ;;  %v522_v52 = vpop.f32.mrb[3].mxu1  ;;  %v1069_v50 = vld [vmem:[%s1950_s22 + $0x8] sm:$0xff] }
 0x3ea   :  { %v523_v53 = vadd.f32 %v1182_v49, %v522_v52  ;;  %v1068_v49 = vld [vmem:[%s1950_s22] sm:$0xff] }
 0x3eb   :  { %v532_v55 = vmax.f32 %v528_v51, 0.0  ;;  %v1070_v51 = vld [vmem:[%s1950_s22 + $0x10] sm:$0xff]  ;;  %v1405_v52 = vpack.c.bf16 %v1069_v50, %v1068_v49 }
 0x3ec   :  { %v531_v54 = vmax.f32 %v523_v53, 0.0  ;;  %v1071_v53 = vld [vmem:[%s1950_s22 + $0x18] sm:$0xff] }
 0x3ee   :  { %1307 = vmatprep.mubr.msk.f32.mxu0 %vm543_vm7, %v531_v54  ;;  %v1409_v54 = vpack.c.bf16 %v1071_v53, %v1070_v51 }
 0x3ef   :  { %1308 = vmatmul.mubr.msk.f32.vlgmr.msra.gmra.mrb[4].mxu0 %vm543_vm7, %v532_v55 }
 0x3f0   :  { %1392 = vmatpush3.bf16.msk.msra.mxu0 %vm1857_vm9, %v1387_v5 }
 0x3f1   :  { %1401 = vmatprep.subr.msk.bf16.mxu0 %vm1400_vm12, %v1399_v26 }
 0x4c2   :  { %v1309_v61 = vpop.f32.mrb[4].mxu0 }
 0x4c3   :  { %v626_v62 = vadd.f32 %v1309_v61, %v1186_v60  ;;  %v620_v63 = vpop.f32.mrb[5].mxu0 }
 0x4c4   :  { %v621_v0 = vadd.f32 %v1186_v60, %v620_v63 }
 0x4c5   :  { %v630_v2 = vmax.f32 %v626_v62, 0.0 }
 0x4c6   :  { %v629_v1 = vmax.f32 %v621_v0, 0.0 }
 0x4c8   :  { %1316 = vmatprep.mubr.msk.f32.mxu1 %vm543_vm7, %v629_v1 }
 0x4c9   :  { %1317 = vmatmul.mubr.msk.f32.vlgmr.msra.gmra.mrb[4].mxu1 %vm543_vm7, %v630_v2 }
 0x4ca   :  { %1398 = vmatpush3.bf16.msk.msra.mxu1 %vm1857_vm9, %v1393_v16 }
 0x4cb   :  { %1406 = vmatprep.subr.bf16.mxu1 %v1405_v52 }
 0x59c   :  { %v1318_v8 = vpop.f32.mrb[4].mxu1 }
 0x59d   :  { %v722_v9 = vadd.f32 %v1318_v8, %v1190_v7  ;;  %v716_v10 = vpop.f32.mrb[5].mxu1 }
 0x59e   :  { %v717_v11 = vadd.f32 %v1190_v7, %v716_v10  ;;  %v1206_v7 = vld [vmem:[%s1948_s20] ss:$0 sm:$0xff] }
 0x59f   :  { %v726_v13 = vmax.f32 %v722_v9, 0.0  ;;  %v1207_v9 = vld [vmem:[%s1949_s21] ss:$0 sm:$0xff] }
 0x5a0   :  { %v725_v12 = vmax.f32 %v717_v11, 0.0 }
 0x5a2   :  { %1323 = vmatprep.mubr.msk.f32.mxu0 %vm736_vm10, %v725_v12 }
 0x5a3   :  { %1324 = vmatmul.mubr.msk.f32.vlgmr.msra.gmra.mrb[6].mxu0 %vm736_vm10, %v726_v13 }
 0x5a4   :  { %1404 = vmatpush3.bf16.msk.msra.mxu0 %vm1400_vm12, %v1399_v26 }
 0x676   :  { %v1325_v18 = vpop.f32.mrb[6].mxu0 }
 0x677   :  { %v819_v19 = vadd.f32 %v1325_v18, %v1194_v17  ;;  %v813_v20 = vpop.f32.mrb[7].mxu0 }
 0x678   :  { %v814_v21 = vadd.f32 %v1194_v17, %v813_v20  ;;  %v1208_v17 = vld [vmem:[#allocation2] ss:$0 sm:$0xff] }
 0x679   :  { %v823_v23 = vmax.f32 %v819_v19, 0.0 }
 0x67a   :  { %v822_v22 = vmax.f32 %v814_v21, 0.0 }
 0x67c   :  { %1330 = vmatprep.mubr.msk.f32.mxu1 %vm736_vm10, %v822_v22 }
 0x67d   :  { %1331 = vmatmul.mubr.msk.f32.vlgmr.msra.gmra.mrb[6].mxu1 %vm736_vm10, %v823_v23 }
 0x67e   :  { %1408 = vmatpush3.bf16.msra.mxu1 %v1405_v52 }
 0x67f   :  { %1410 = vmatprep.subr.bf16.mxu1 %v1409_v54 }
 0x682   :  { %1412 = vmatpush3.bf16.msra.mxu1 %v1409_v54 }
 0x750   :  { %v1332_v28 = vpop.f32.mrb[6].mxu1 }
 0x751   :  { %v914_v29 = vadd.f32 %v1332_v28, %v1198_v27  ;;  %v908_v30 = vpop.f32.mrb[7].mxu1 }
 0x752   :  { %v909_v31 = vadd.f32 %v1198_v27, %v908_v30 }
 0x753   :  { %v918_v33 = vmax.f32 %v914_v29, 0.0 }
 0x754   :  { %v917_v32 = vmax.f32 %v909_v31, 0.0 }
 0x756   :  { %1337 = vmatprep.mubr.msk.f32.mxu0 %vm928_vm13, %v917_v32 }
 0x757   :  { %1338 = vmatmul.mubr.msk.f32.vlgmr.msra.gmra.mrb[8].mxu0 %vm928_vm13, %v918_v33 }
 0x82a   :  { %v1339_v35 = vpop.f32.mrb[8].mxu0 }
 0x82b   :  { %v1011_v36 = vadd.f32 %v1339_v35, %v1202_v34  ;;  %v1005_v38 = vpop.f32.mrb[9].mxu0 }
 0x82c   :  { %v1006_v40 = vadd.f32 %v1202_v34, %v1005_v38 }
 0x82d   :  { %v1017_v41 = vadd.f32 %v1015_v37, %v1011_v36 }
 0x82e   :  { %v1016_v42 = vadd.f32 %v1014_v39, %v1006_v40 }
 0x82f   :  { %v1029_v46 = vmul.f32 %v1017_v41, %v1017_v41  ;;  %v1022_v47 = vsel %vm1018_vm14, %v1017_v41, 0.0 }
 0x830   :  { %v1019_v43 = vsel %vm1018_vm14, %v1016_v42, 0.0  ;;  %v1028_v44 = vmul.f32 %v1016_v42, %v1016_v42 }
 0x831   :  { %1020 = vadd.xlane.f32.xlu0 %v1019_v43  ;;  %v1033_v48 = vsel %vm1018_vm14, %v1029_v46, 0.0 }
 0x832   :  { %v1030_v45 = vsel %vm1018_vm14, %v1028_v44, 0.0 }
 0x833   :  { %1031 = vadd.xlane.f32.xlu1 %v1030_v45 }
 0x835   :  { %1023 = vadd.xlane.f32.xlu0 %v1022_v47 }
 0x837   :  { %1034 = vadd.xlane.f32.xlu1 %v1033_v48 }
 0x8be   :  { %v1021_v55 = vpop.xlane.xlu0 %1020 }
 0x8bf   :  { %v1026_v56 = vmul.f32 0.03125, %v1021_v55 }
 0x8c0   :  { %v1032_v57 = vpop.xlane.xlu1 %1031 }
 0x8c1   :  { %v1038_v58 = vmul.f32 %v1026_v56, %v1026_v56  ;;  %v1036_v59 = vmul.f32 0.03125, %v1032_v57  ;;  %v1042_v5 = vsub.f32 %v1016_v42, %v1026_v56 }
 0x8c2   :  { %v1024_v60 = vpop.xlane.xlu0 %1023 }
 0x8c3   :  { %v1040_v61 = vsub.f32 %v1036_v59, %v1038_v58  ;;  %v1027_v62 = vmul.f32 0.03125, %v1024_v60 }
 0x8c4   :  { %v1035_v63 = vpop.xlane.xlu1 %1034 }
 0x8c5   :  { %v1044_v0 = vadd.f32 1e-05, %v1040_v61  ;;  %v1039_v1 = vmul.f32 %v1027_v62, %v1027_v62  ;;  %v1037_v2 = vmul.f32 0.03125, %v1035_v63  ;;  %v1043_v10 = vsub.f32 %v1017_v41, %v1027_v62 }
 0x8c7   :  { %1421 = vrsqrt.f32 %v1044_v0  ;;  %v1041_v3 = vsub.f32 %v1037_v2, %v1039_v1 }
 0x8c9   :  { %v1045_v4 = vadd.f32 1e-05, %v1041_v3 }
 0x8cb   :  { %1423 = vrsqrt.f32 %v1045_v4 }
 0x8d1   :  { %v1422_v6 = vpop.eup %1421 }
 0x8d2   :  { %v1048_v8 = vmul.f32 %v1422_v6, %v1042_v5 }
 0x8d4   :  { %v1057_v11 = vmul.f32 %v1206_v7, %v1048_v8 }
 0x8d5   :  { %v1424_v12 = vpop.eup %1423 }
 0x8d6   :  { %v1049_v13 = vmul.f32 %v1424_v12, %v1043_v10  ;;  %v1066_v14 = vadd.f32 %v1207_v9, %v1057_v11 }
 0x8d8   :  { %v1058_v15 = vmul.f32 %v1206_v7, %v1049_v13  ;;  %1348 = vmatprep.mubr.msk.f32.mxu1 %vm1018_vm14, %v1066_v14 }
 0x8da   :  { %v1067_v16 = vadd.f32 %v1207_v9, %v1058_v15 }
 0x8dc   :  { %1349 = vmatmul.mubr.msk.f32.vlgmr.msra.gmra.mrb[8].mxu1 %vm1018_vm14, %v1067_v16 }
 0x9af   :  { %v1350_v18 = vpop.f32.mrb[8].mxu1 }
 0x9b0   :  { %v1157_v19 = vadd.f32 %v1350_v18, %v1208_v17  ;;  %v1151_v20 = vpop.f32.mrb[9].mxu1 }
 0x9b1   :  { %v1152_v21 = vadd.f32 %v1208_v17, %v1151_v20 }
 0x9b2   :  { %1162 = vst.msk [vmem:[%s1952_s24 + $0x8] sm:$0xff] %vm1160_vm15, %v1157_v19 }
 0x9b3   :  { %1161 = vst.msk [vmem:[%s1952_s24] sm:$0xff] %vm1160_vm15, %v1152_v21 }
 0x9b4   :  { %1167 = vsyncpa [#allocation4], 1 }
 0x9b5   :  { %1168 = vsyncpa [#allocation6], 1 }
 0x9b6   :  { %1169 = vsyncpa [#allocation9], 1 }

</bundles_post_ra>
